<compile_context>
chip_gen: v6e
topology: v6e:2x2x1
jax: 0.10.0
libtpu: 0.0.40
codegen_flags: <defaults>
</compile_context>

<pallas_src>
import jax
import jax.numpy as jnp
from jax.experimental import pallas as pl
from jax.experimental.pallas import tpu as pltpu


def _linear_add_kernel(x1_ref, w_ref, b_ref, x2_ref, o_ref):
    # MXU matmul with f32 accumulation; bias + residual add ride on the VPU
    # (free VALU slots under the MXU result pop), single cast at the end.
    y = jnp.dot(x1_ref[...], w_ref[...], preferred_element_type=jnp.float32)
    o_ref[...] = (x2_ref[...].astype(jnp.float32) + y
                  + b_ref[...].astype(jnp.float32)).astype(o_ref.dtype)


def _linear_add_single_block(x1, w, b, x2):
    """Grid-less path: whole problem is one VMEM-resident block.

    For the spec-sized batch=1 case this is launch/DMA-latency bound
    (~20 KiB total traffic); no in-kernel tuning moves it meaningfully.
    """
    batch, _ = x1.shape
    out_f = w.shape[1]
    return pl.pallas_call(
        _linear_add_kernel,
        out_shape=jax.ShapeDtypeStruct((batch, out_f), x2.dtype),
        in_specs=[pl.BlockSpec(memory_space=pltpu.MemorySpace.VMEM)] * 4,
        out_specs=pl.BlockSpec(memory_space=pltpu.MemorySpace.VMEM),
    )(x1, w, b, x2)


def _round_up(x, m):
    return ((x + m - 1) // m) * m


def _choose_tm(batch, *, min_tm=1024, align=256, max_steps=8):
    """Pick a batch tile: few (<=8) pipelined steps, each >= min_tm rows.

    Per-row VMEM cost is ~768 B f32, so even ~8K-row tiles double-buffered
    stay well under the scoped VMEM default on every generation (incl. v7x).
    When the grid has >1 step, keep it even so v7x's two TensorCores both
    get work under dimension_semantics=("parallel",).
    """
    tm = max(min_tm, _round_up(pl.cdiv(batch, max_steps), align))
    steps = pl.cdiv(batch, tm)
    if steps > 1 and steps % 2 == 1:
        steps += 1
        tm = max(align, _round_up(pl.cdiv(batch, steps), align))
    return tm


def _linear_add_tiled(x1, w, b, x2, tm):
    """Batched path: tile the batch axis, keep weight/bias resident."""
    batch, in_f = x1.shape
    out_f = w.shape[1]
    grid = (pl.cdiv(batch, tm),)
    return pl.pallas_call(
        _linear_add_kernel,
        out_shape=jax.ShapeDtypeStruct((batch, out_f), x2.dtype),
        grid_spec=pltpu.PrefetchScalarGridSpec(
            num_scalar_prefetch=0,
            grid=grid,
            in_specs=[
                pl.BlockSpec((tm, in_f), lambda i: (i, 0)),     # x1 stream
                pl.BlockSpec((in_f, out_f), lambda i: (0, 0)),  # weight resident
                pl.BlockSpec((1, out_f), lambda i: (0, 0)),     # bias resident
                pl.BlockSpec((tm, out_f), lambda i: (i, 0)),    # x2 stream
            ],
            out_specs=pl.BlockSpec((tm, out_f), lambda i: (i, 0)),
        ),
        compiler_params=pltpu.CompilerParams(
            dimension_semantics=("parallel",),  # v7x: shard batch over 2 TCs
        ),
    )(x1, w, b, x2)


@jax.jit
def linear_add(x1, w, b, x2):
    batch = x1.shape[0]
    # Small batches: a single VMEM block is cheaper than any pipeline.
    if batch <= 1024:
        return _linear_add_single_block(x1, w, b, x2)
    # Large batches: big tiles, a handful of pipelined steps (even grid).
    tm = _choose_tm(batch)
    return _linear_add_tiled(x1, w, b, x2, tm)


if __name__ == "__main__":
    key = jax.random.PRNGKey(0)
    k1, k2, kw, kb, k3, k4 = jax.random.split(key, 6)

    in_features, out_features = 128, 32
    batch = 1  # matches the PyTorch spec: x1 = torch.randn(1, 128)

    # Parameters mimicking torch.nn.Linear init: weight (out, in), bias (out,)
    bound = 1.0 / (in_features ** 0.5)
    w_torch = jax.random.uniform(kw, (out_features, in_features),
                                 minval=-bound, maxval=bound, dtype=jnp.float32)
    b_torch = jax.random.uniform(kb, (out_features,),
                                 minval=-bound, maxval=bound, dtype=jnp.float32)

    x1 = jax.random.normal(k1, (batch, in_features), dtype=jnp.float32)
    x2 = jax.random.normal(k2, (batch, out_features), dtype=jnp.float32)

    # Kernel wants weight as (in, out) and bias as (1, out)
    w = w_torch.T
    b = b_torch.reshape(1, out_features)

    ref = x1 @ w_torch.T + b_torch + x2
    out = linear_add(x1, w, b, x2)
    jax.block_until_ready(out)
    assert out.shape == (batch, out_features)
    assert jnp.allclose(out, ref, atol=1e-5, rtol=1e-5), "mismatch (single block)"

    # Exercise the batched/tiled path as well (correctness check): batch=2048
    # -> tm=1024, grid=(2,) (even, pipelined).
    big_batch = 2048
    x1b = jax.random.normal(k3, (big_batch, in_features), dtype=jnp.float32)
    x2b = jax.random.normal(k4, (big_batch, out_features), dtype=jnp.float32)
    refb = x1b @ w_torch.T + b_torch + x2b
    outb = linear_add(x1b, w, b, x2b)
    jax.block_until_ready(outb)
    assert jnp.allclose(outb, refb, atol=1e-4, rtol=1e-5), "mismatch (tiled)"

    print("KERNEL_OK")
</pallas_src>

<mosaic_0001>
module attributes {stable_mosaic.version = 11 : i64} {
  func.func @_linear_add_kernel(%arg0: memref<1x128xf32, #tpu.memory_space<vmem>>, %arg1: memref<128x32xf32, #tpu.memory_space<vmem>>, %arg2: memref<1x32xf32, #tpu.memory_space<vmem>>, %arg3: memref<1x32xf32, #tpu.memory_space<vmem>>, %arg4: memref<1x32xf32, #tpu.memory_space<vmem>>) attributes {dimension_semantics = [], scalar_prefetch = 0 : i64, scratch_operands = 0 : i64, tpu.core_type = #tpu.core_type<tc>} {
    %c0 = arith.constant 0 : index
    %c0_0 = arith.constant 0 : index
    %0 = vector.load %arg0[%c0, %c0_0] : memref<1x128xf32, #tpu.memory_space<vmem>>, vector<1x128xf32>
    %c0_1 = arith.constant 0 : index
    %c0_2 = arith.constant 0 : index
    %1 = vector.load %arg1[%c0_1, %c0_2] : memref<128x32xf32, #tpu.memory_space<vmem>>, vector<128x32xf32>
    %cst = arith.constant dense<0.000000e+00> : vector<1x32xf32>
    %2 = tpu.matmul %0, %1, %cst {dimension_numbers = #tpu.dot_dimension_numbers<[1], [0], [0], [1], [0, 0, 1, 1], [], []>} : vector<1x128xf32>, vector<128x32xf32>, vector<1x32xf32> -> vector<1x32xf32>
    %c0_3 = arith.constant 0 : index
    %c0_4 = arith.constant 0 : index
    %3 = vector.load %arg3[%c0_3, %c0_4] : memref<1x32xf32, #tpu.memory_space<vmem>>, vector<1x32xf32>
    %4 = arith.addf %3, %2 : vector<1x32xf32>
    %c0_5 = arith.constant 0 : index
    %c0_6 = arith.constant 0 : index
    %5 = vector.load %arg2[%c0_5, %c0_6] : memref<1x32xf32, #tpu.memory_space<vmem>>, vector<1x32xf32>
    %6 = arith.addf %4, %5 : vector<1x32xf32>
    %c0_7 = arith.constant 0 : index
    %c0_8 = arith.constant 0 : index
    %7 = vector.load %arg4[%c0_7, %c0_8] : memref<1x32xf32, #tpu.memory_space<vmem>>, vector<1x32xf32>
    tpu.vector_store %arg4[%c0_7, %c0_8], %6 {strides = array<i32>} : memref<1x32xf32, #tpu.memory_space<vmem>>, vector<1x32xf32>,
    return
  }
}

</mosaic_0001>

<bundles_post_ra>
// kernel: linear_add.1
= control target key start
LH: loop header
LB: loop body
LE: loop exit
PB: predicated region body
PF: predicated region fallthrough
CT: control target
= control target key end

     0   :  { %v202_v1 = vmov 0.0   ;;  %vm203_vm0 = vmmov 0   ;;  %s290_s0 = inlined_call_operand.vmem [shape: f32[1,128], index: 0, kind: input, shape index: {}]   ;;  %s291_s1 = inlined_call_operand.vmem [shape: f32[128,32], index: 1, kind: input, shape index: {}]   ;;  %s292_s2 = inlined_call_operand.vmem [shape: f32[1,32], index: 2, kind: input, shape index: {}]   ;;  %s293_s3 = inlined_call_operand.vmem [shape: f32[1,32], index: 3, kind: input, shape index: {}]   ;;  %s294_s4 = inlined_call_operand.hbm [shape: f32[1,32], index: 4, kind: output, shape index: {}]  }
   0x1   :  { %v34_v0 = vld [vmem:[%s291_s1 + $0x78] sm:$0xff]  ;;  %142 = vmatprep.subr.mxu0 %v202_v1  ;;  %v33_v2 = vld [vmem:[%s291_s1 + $0x70] sm:$0xff]  ;;  %174 = vmatprep.mubr.msk.f32.mxu0 %vm203_vm0, %v202_v1  ;;  %v32_v3 = vld [vmem:[%s291_s1 + $0x68] sm:$0xff] }
   0x2   :  { %143 = vmatpush3.msra.mxu0 %v34_v0  ;;  %v31_v4 = vld [vmem:[%s291_s1 + $0x60] sm:$0xff] }
   0x3   :  { %144 = vmatprep.subr.mxu0 %v202_v1 }
   0x4   :  { %145 = vmatpush3.msra.mxu0 %v33_v2 }
   0x5   :  { %146 = vmatprep.subr.mxu0 %v202_v1 }
   0x6   :  { %9 = vsyncpa [#allocation3], 0  ;;  %147 = vmatpush3.msra.mxu0 %v32_v3  ;;  %v30_v5 = vld [vmem:[%s291_s1 + $0x58] sm:$0xff]  ;;  %v29_v6 = vld [vmem:[%s291_s1 + $0x50] sm:$0xff]  ;;  %s204_s27 = smov [#allocation2]   ;;  %vm109_vm1 = vcmask 253952  }
   0x7   :  { %148 = vmatprep.subr.mxu0 %v202_v1  ;;  %v28_v7 = vld [vmem:[%s291_s1 + $0x48] sm:$0xff]  ;;  %v27_v8 = vld [vmem:[%s291_s1 + $0x40] sm:$0xff]  ;;  %v26_v9 = vld [vmem:[%s291_s1 + $0x38] sm:$0xff]  ;;  %s117_s28 = sshll.u32 %s204_s27, 4  ;;  %s118_s28 = int_to_ptr.vmem [resolvable:$true] %s117_s28 }
   0x8   :  { %149 = vmatpush3.msra.mxu0 %v31_v4  ;;  %v25_v10 = vld [vmem:[%s291_s1 + $0x30] sm:$0xff]  ;;  %v24_v11 = vld [vmem:[%s291_s1 + $0x28] sm:$0xff]  ;;  %v23_v12 = vld [vmem:[%s291_s1 + $0x20] sm:$0xff]  ;;  %p185_p1 = scmp.lt.s32.totalorder %s118_s28, %s118_s28 }
   0x9   :  { %150 = vmatprep.subr.mxu0 %v202_v1  ;;  %v22_v13 = vld [vmem:[%s291_s1 + $0x18] sm:$0xff]  ;;  %v21_v14 = vld [vmem:[%s291_s1 + $0x10] sm:$0xff]  ;;  %v20_v15 = vld [vmem:[%s291_s1 + $0x8] sm:$0xff] }
   0xa   :  { %151 = vmatpush3.msra.mxu0 %v30_v5  ;;  %v19_v16 = vld [vmem:[%s291_s1] sm:$0xff]  ;;  %s184_s1 = scalar_lea.vmem %s118_s28, 32 }
   0xb   :  { %152 = vmatprep.subr.mxu0 %v202_v1  ;;  %v18_v17 = vld [vmem:[%s290_s0] sm:$0x1]  ;;  %s180_s0 = scalar_lea.vmem %s118_s28, 16 }
   0xc   :  { %153 = vmatpush3.msra.mxu0 %v29_v6  ;;  %v105_v18 = vld [vmem:[%s293_s3] sm:$0x1]  ;;  %p181_p0 = scmp.ne.s32.totalorder %s118_s28, %s180_s0  ;;  %p186_p2 = scmp.lt.s32.totalorder %s184_s1, %s180_s0 }
   0xd   :  { %154 = vmatprep.subr.mxu0 %v202_v1  ;;  %v107_v20 = vld [vmem:[%s292_s2] sm:$0x1] }
   0xe   :  { %155 = vmatpush3.msra.mxu0 %v28_v7  ;;  %p187_p3 = por %p186_p2, %p185_p1 }
   0xf   :  { %156 = vmatprep.subr.mxu0 %v202_v1 }
  0x10   :  { %157 = vmatpush3.msra.mxu0 %v27_v8  ;;  %p188_p4 = pnand %p187_p3, %p181_p0 }
  0x11   :  { %158 = vmatprep.subr.mxu0 %v202_v1 }
  0x12   :  { %159 = vmatpush3.msra.mxu0 %v26_v9 }
  0x13   :  { %160 = vmatprep.subr.mxu0 %v202_v1 }
  0x14   :  { %161 = vmatpush3.msra.mxu0 %v25_v10 }
  0x15   :  { %162 = vmatprep.subr.mxu0 %v202_v1 }
  0x16   :  { %163 = vmatpush3.msra.mxu0 %v24_v11 }
  0x17   :  { %164 = vmatprep.subr.mxu0 %v202_v1 }
  0x18   :  { %165 = vmatpush3.msra.mxu0 %v23_v12 }
  0x19   :  { %166 = vmatprep.subr.mxu0 %v202_v1 }
  0x1a   :  { %167 = vmatpush3.msra.mxu0 %v22_v13 }
  0x1b   :  { %168 = vmatprep.subr.mxu0 %v202_v1 }
  0x1c   :  { %169 = vmatpush3.msra.mxu0 %v21_v14 }
  0x1d   :  { %170 = vmatprep.subr.mxu0 %v202_v1 }
  0x1e   :  { %171 = vmatpush3.msra.mxu0 %v20_v15 }
  0x1f   :  { %172 = vmatprep.subr.mxu0 %v202_v1 }
  0x20   :  { %173 = vmatpush3.msra.mxu0 %v19_v16 }
  0x21   :  { %175 = vmatmul.mubr.f32.vlgmr.msra.gmra.mxu0 %v18_v17 }
  0xe1   :  { %v101_v19 = vpop.f32.mrf.mxu0 }
  0xe2   :  { %v106_v21 = vadd.f32 %v105_v18, %v101_v19 }
  0xe3   :  { %v176_v22 = vpop.f32.mrf.mxu0 }
  0xe4   :  { %v108_v23 = vadd.f32 %v107_v20, %v106_v21 }
  0xe6   :  { %110 = vst.msk [vmem:[#allocation2] sm:$0x1] %vm109_vm1, %v108_v23 }
  0xe7   :  { %191 = shalt.err (!%p188_p4)
}
  0xe8   :  { %120 = dma.vmem_to_hbm [thread:$0]  %s118_s28, 16, %s294_s4, [#allocation3]  }
  0xe9   :  { %200 = dma.done.wait [#allocation3], 16  }
  0xea   :  { %201 = vsyncadd [#allocation3], 4294967280 }
  0xeb   :  { %124 = vsyncpa [#allocation3], 1 }

</bundles_post_ra>
